<compile_context>
chip_gen: v5e
topology: v5e:2x2
jax: 0.10.0
libtpu: 0.0.40
codegen_flags: <defaults>
</compile_context>

<pallas_src>
import functools
import math

import jax
import jax.numpy as jnp
from jax.experimental import pallas as pl
from jax.experimental.pallas import tpu as pltpu


_NEG_INF = -1e30  # large-negative instead of -inf: avoids (-inf) - (-inf) NaNs


def _round_up(x, m):
    return ((x + m - 1) // m) * m


def _pad3(x, s0, s1, s2):
    if (s0, s1, s2) == x.shape:
        return x
    return jnp.pad(x, ((0, s0 - x.shape[0]),
                       (0, s1 - x.shape[1]),
                       (0, s2 - x.shape[2])))


# --------------------------------------------------------------------------
# Fast path: whole kv sequence fits in one tile -> single-pass softmax,
# multiple batch elements per grid step.
# --------------------------------------------------------------------------
def _sdpa_small_kernel(q_ref, k_ref, v_ref, o_ref, *, scale, nk_valid,
                       needs_kv_mask):
    """q_ref/o_ref: (bb, tq, d_p)   k_ref/v_ref: (bb, nk_p, d_p)."""
    q = q_ref[...] * scale                                     # native dtype
    s = jnp.einsum("bqd,bkd->bqk", q, k_ref[...],
                   preferred_element_type=jnp.float32)         # (bb, tq, nk_p)
    if needs_kv_mask:
        col = jax.lax.broadcasted_iota(jnp.int32, s.shape, 2)
        s = jnp.where(col < nk_valid, s, _NEG_INF)

    m = jnp.max(s, axis=-1, keepdims=True)                     # (bb, tq, 1)
    p = jnp.exp(s - m)
    l = jnp.sum(p, axis=-1, keepdims=True)
    acc = jnp.einsum("bqk,bkd->bqd", p.astype(v_ref.dtype), v_ref[...],
                     preferred_element_type=jnp.float32)       # (bb, tq, d_p)
    # Deferred normalization: one (bb, tq, d_p) multiply.
    o_ref[...] = (acc * pl.reciprocal(l, approx=False)).astype(o_ref.dtype)


# --------------------------------------------------------------------------
# Flash path: long kv sequence -> online softmax over kv tiles.
# --------------------------------------------------------------------------
def _flash_attn_kernel(q_ref, k_ref, v_ref, o_ref, m_scr, l_scr, acc_scr, *,
                       scale, nk_valid, block_k, needs_kv_mask):
    """q_ref/o_ref: (tq, d_p)   k_ref/v_ref: (tk, d_p).  Scratch persists
    across the kv grid axis (marked 'arbitrary')."""
    kv_idx = pl.program_id(2)

    @pl.when(kv_idx == 0)
    def _init():
        m_scr[...] = jnp.full_like(m_scr, _NEG_INF)
        l_scr[...] = jnp.zeros_like(l_scr)
        acc_scr[...] = jnp.zeros_like(acc_scr)

    q = q_ref[...] * scale                                     # (tq, d_p)
    s = jax.lax.dot_general(
        q, k_ref[...],
        dimension_numbers=(((1,), (1,)), ((), ())),
        preferred_element_type=jnp.float32)                    # (tq, tk) f32

    if needs_kv_mask:
        col = kv_idx * block_k + jax.lax.broadcasted_iota(jnp.int32, s.shape, 1)
        s = jnp.where(col < nk_valid, s, _NEG_INF)

    # --- online softmax update (elementwise math in f32) ---
    m_prev = m_scr[...]                                        # (tq, 1)
    m_new = jnp.maximum(m_prev, jnp.max(s, axis=-1, keepdims=True))
    alpha = jnp.exp(m_prev - m_new)                            # (tq, 1)
    p = jnp.exp(s - m_new)                                     # (tq, tk)

    l_scr[...] = alpha * l_scr[...] + jnp.sum(p, axis=-1, keepdims=True)
    acc_scr[...] = alpha * acc_scr[...] + jnp.dot(
        p.astype(v_ref.dtype), v_ref[...],
        preferred_element_type=jnp.float32)                    # (tq, d_p)
    m_scr[...] = m_new

    @pl.when(kv_idx == pl.num_programs(2) - 1)
    def _finalize():
        inv_l = pl.reciprocal(l_scr[...], approx=False)
        o_ref[...] = (acc_scr[...] * inv_l).astype(o_ref.dtype)


# --------------------------------------------------------------------------
# Wrapper
# --------------------------------------------------------------------------
def simplified_sdpa(queries, keys, values, *, block_q=256, block_k=256,
                    batch_block_bytes=8 * 1024 * 1024,
                    vmem_limit_bytes=64 * 1024 * 1024):
    """softmax(Q K^T / sqrt(d_model)) V  (mask / weights = None path).

    queries: (b_s, nq, d_model)   keys/values: (b_s, nk, d_model)
    returns: (b_s, nq, d_model)
    """
    b_s, nq, d_model = queries.shape
    _, nk, _ = keys.shape
    assert keys.shape == (b_s, nk, d_model) and values.shape == (b_s, nk, d_model)

    dtype = queries.dtype
    scale = 1.0 / math.sqrt(d_model)

    # Sublane granularity: 8 rows of 32-bit; sub-32-bit dtypes pack along sublanes.
    itemsize = jnp.dtype(dtype).itemsize
    seq_align = 8 * max(1, 4 // itemsize)

    nq_a = _round_up(nq, seq_align)
    nk_a = _round_up(nk, seq_align)
    d_p = _round_up(d_model, 128)          # lane-dense blocks / unmasked stores

    # ---------------- fast path: whole kv axis in one tile ----------------
    if nk_a <= max(block_k, seq_align):
        tq = min(_round_up(block_q, seq_align), nq_a)
        nq_p = _round_up(nq_a, tq)
        nk_p = nk_a

        # Pick a batch block from a VMEM budget (x2 for double buffering).
        per_batch = (2 * tq + 2 * nk_p) * d_p * itemsize       # q + o + k + v
        bb = max(1, batch_block_bytes // (2 * per_batch))
        bb = min(bb, 1024, b_s)
        b_p = _round_up(b_s, bb)

        q_p = _pad3(queries, b_p, nq_p, d_p)
        k_p = _pad3(keys, b_p, nk_p, d_p)
        v_p = _pad3(values, b_p, nk_p, d_p)

        kernel = functools.partial(
            _sdpa_small_kernel,
            scale=scale, nk_valid=nk, needs_kv_mask=(nk_p != nk))

        out = pl.pallas_call(
            kernel,
            out_shape=jax.ShapeDtypeStruct((b_p, nq_p, d_p), dtype),
            grid_spec=pltpu.PrefetchScalarGridSpec(
                num_scalar_prefetch=0,
                grid=(b_p // bb, nq_p // tq),
                in_specs=[
                    pl.BlockSpec((bb, tq, d_p), lambda b, qi: (b, qi, 0)),
                    pl.BlockSpec((bb, nk_p, d_p), lambda b, qi: (b, 0, 0)),
                    pl.BlockSpec((bb, nk_p, d_p), lambda b, qi: (b, 0, 0)),
                ],
                out_specs=pl.BlockSpec((bb, tq, d_p), lambda b, qi: (b, qi, 0)),
            ),
            compiler_params=pltpu.CompilerParams(
                dimension_semantics=("parallel", "parallel"),
                vmem_limit_bytes=vmem_limit_bytes,
            ),
        )(q_p, k_p, v_p)

        if b_p != b_s or nq_p != nq or d_p != d_model:
            out = out[:b_s, :nq, :d_model]
        return out

    # ---------------- flash path: long kv sequence ----------------
    tq = min(_round_up(block_q, seq_align), nq_a)
    tk = min(_round_up(block_k, seq_align), nk_a)
    nq_p = _round_up(nq_a, tq)
    nk_p = _round_up(nk_a, tk)

    # Zero padding is correctness-preserving: zero feature columns do not change
    # Q K^T; padded K rows are masked to -inf in-kernel; padded Q rows / V
    # columns are sliced off below.
    q_p = _pad3(queries, b_s, nq_p, d_p)
    k_p = _pad3(keys, b_s, nk_p, d_p)
    v_p = _pad3(values, b_s, nk_p, d_p)

    kernel = functools.partial(
        _flash_attn_kernel,
        scale=scale, nk_valid=nk, block_k=tk, needs_kv_mask=(nk_p != nk))

    out = pl.pallas_call(
        kernel,
        out_shape=jax.ShapeDtypeStruct((b_s, nq_p, d_p), dtype),
        grid_spec=pltpu.PrefetchScalarGridSpec(
            num_scalar_prefetch=0,
            grid=(b_s, nq_p // tq, nk_p // tk),
            in_specs=[
                pl.BlockSpec((pl.Squeezed(), tq, d_p), lambda b, qi, ki: (b, qi, 0)),
                pl.BlockSpec((pl.Squeezed(), tk, d_p), lambda b, qi, ki: (b, ki, 0)),
                pl.BlockSpec((pl.Squeezed(), tk, d_p), lambda b, qi, ki: (b, ki, 0)),
            ],
            out_specs=pl.BlockSpec((pl.Squeezed(), tq, d_p),
                                   lambda b, qi, ki: (b, qi, 0)),
            scratch_shapes=[
                pltpu.VMEM((tq, 1), jnp.float32),    # running max
                pltpu.VMEM((tq, 1), jnp.float32),    # running sum
                pltpu.VMEM((tq, d_p), jnp.float32),  # f32 accumulator
            ],
        ),
        compiler_params=pltpu.CompilerParams(
            dimension_semantics=("parallel", "parallel", "arbitrary"),
            vmem_limit_bytes=vmem_limit_bytes,
        ),
    )(q_p, k_p, v_p)

    if nq_p != nq or d_p != d_model:
        out = out[:, :nq, :d_model]
    return out


def _reference(queries, keys, values):
    d_model = queries.shape[-1]
    att = jnp.einsum("bqd,bkd->bqk", queries, keys,
                     preferred_element_type=jnp.float32) / math.sqrt(d_model)
    att = jax.nn.softmax(att, axis=-1)
    return jnp.einsum("bqk,bkd->bqd", att, values)


if __name__ == "__main__":
    key = jax.random.PRNGKey(0)
    b_s, nq, nk, d_model = 2, 8, 8, 32

    kq, kk, kv = jax.random.split(key, 3)
    queries = jax.random.normal(kq, (b_s, nq, d_model), dtype=jnp.float32)
    keys = jax.random.normal(kk, (b_s, nk, d_model), dtype=jnp.float32)
    values = jax.random.normal(kv, (b_s, nk, d_model), dtype=jnp.float32)

    # f32, fast path (single kv tile, batch-blocked).
    out = jax.block_until_ready(simplified_sdpa(queries, keys, values))
    ref = _reference(queries, keys, values)
    assert out.shape == (b_s, nq, d_model)
    assert jnp.allclose(out, ref, atol=1e-4, rtol=1e-4), "f32 mismatch vs reference"

    # bf16, fast path: native-dtype MXU operands with f32 accumulation; also
    # exercises kv padding + in-kernel masking (nk=8 pads to the bf16 tile of 16).
    q16, k16, v16 = (x.astype(jnp.bfloat16) for x in (queries, keys, values))
    out16 = jax.block_until_ready(simplified_sdpa(q16, k16, v16))
    ref16 = _reference(q16.astype(jnp.float32), k16.astype(jnp.float32),
                       v16.astype(jnp.float32))
    assert out16.shape == (b_s, nq, d_model)
    assert jnp.allclose(out16.astype(jnp.float32), ref16, atol=5e-2, rtol=5e-2), \
        "bf16 mismatch vs reference"

    # Flash path: force multiple kv tiles (online softmax + kv masking + q/kv padding).
    kq2, kk2, kv2 = jax.random.split(jax.random.PRNGKey(1), 3)
    nq2, nk2 = 96, 96
    q2 = jax.random.normal(kq2, (b_s, nq2, d_model), dtype=jnp.float32)
    k2 = jax.random.normal(kk2, (b_s, nk2, d_model), dtype=jnp.float32)
    v2 = jax.random.normal(kv2, (b_s, nk2, d_model), dtype=jnp.float32)
    out2 = jax.block_until_ready(
        simplified_sdpa(q2, k2, v2, block_q=64, block_k=64))
    ref2 = _reference(q2, k2, v2)
    assert out2.shape == (b_s, nq2, d_model)
    assert jnp.allclose(out2, ref2, atol=1e-4, rtol=1e-4), \
        "flash-path mismatch vs reference"

    print("KERNEL_OK")
</pallas_src>

<mosaic_0001>
module attributes {stable_mosaic.version = 11 : i64} {
  func.func @_sdpa_small_kernel(%arg0: i32, %arg1: i32, %arg2: memref<2x8x128xf32, #tpu.memory_space<vmem>>, %arg3: memref<2x8x128xf32, #tpu.memory_space<vmem>>, %arg4: memref<2x8x128xf32, #tpu.memory_space<vmem>>, %arg5: memref<2x8x128xf32, #tpu.memory_space<vmem>>) attributes {dimension_semantics = [#tpu.dimension_semantics<parallel>, #tpu.dimension_semantics<parallel>], iteration_bounds = array<i64: 1, 1>, scalar_prefetch = 0 : i64, scratch_operands = 0 : i64, tpu.core_type = #tpu.core_type<tc>, window_params = [{transform_indices = @transform_0, window_bounds = array<i64: 2, 8, 128>}, {transform_indices = @transform_1, window_bounds = array<i64: 2, 8, 128>}, {transform_indices = @transform_2, window_bounds = array<i64: 2, 8, 128>}, {transform_indices = @transform_3, window_bounds = array<i64: 2, 8, 128>}]} {
    %c0 = arith.constant 0 : index
    %c0_0 = arith.constant 0 : index
    %c0_1 = arith.constant 0 : index
    %0 = vector.load %arg2[%c0, %c0_0, %c0_1] : memref<2x8x128xf32, #tpu.memory_space<vmem>>, vector<2x8x128xf32>
    %cst = arith.constant 0.176776692 : f32
    %1 = vector.broadcast %cst : f32 to vector<2x8x128xf32>
    %2 = arith.mulf %0, %1 : vector<2x8x128xf32>
    %c0_2 = arith.constant 0 : index
    %c0_3 = arith.constant 0 : index
    %c0_4 = arith.constant 0 : index
    %3 = vector.load %arg3[%c0_2, %c0_3, %c0_4] : memref<2x8x128xf32, #tpu.memory_space<vmem>>, vector<2x8x128xf32>
    "tpu.trace_start"() <{level = 10 : i32, message = "bqd,bkd->bqk"}> : () -> ()
    %cst_5 = arith.constant dense<0.000000e+00> : vector<2x8x8xf32>
    %4 = tpu.matmul %2, %3, %cst_5 {dimension_numbers = #tpu.dot_dimension_numbers<[2], [2], [1], [1], [0, 0, 0, 1, 1, 1], [0], [0]>} : vector<2x8x128xf32>, vector<2x8x128xf32>, vector<2x8x8xf32> -> vector<2x8x8xf32>
    "tpu.trace_stop"() : () -> ()
    %cst_6 = arith.constant dense<0xFF800000> : vector<2x8xf32>
    %5 = vector.multi_reduction <maximumf>, %4, %cst_6 [2] : vector<2x8x8xf32> to vector<2x8xf32>
    %6 = vector.shape_cast %5 : vector<2x8xf32> to vector<2x8x1xf32>
    %7 = vector.broadcast %6 : vector<2x8x1xf32> to vector<2x8x8xf32>
    %8 = arith.subf %4, %7 : vector<2x8x8xf32>
    %9 = math.exp %8 : vector<2x8x8xf32>
    %cst_7 = arith.constant dense<0.000000e+00> : vector<2x8xf32>
    %10 = vector.multi_reduction <add>, %9, %cst_7 [2] : vector<2x8x8xf32> to vector<2x8xf32>
    %11 = vector.shape_cast %10 : vector<2x8xf32> to vector<2x8x1xf32>
    %c0_8 = arith.constant 0 : index
    %c0_9 = arith.constant 0 : index
    %c0_10 = arith.constant 0 : index
    %12 = vector.load %arg4[%c0_8, %c0_9, %c0_10] : memref<2x8x128xf32, #tpu.memory_space<vmem>>, vector<2x8x128xf32>
    "tpu.trace_start"() <{level = 10 : i32, message = "bqk,bkd->bqd"}> : () -> ()
    %cst_11 = arith.constant dense<0.000000e+00> : vector<2x8x128xf32>
    %13 = tpu.matmul %9, %12, %cst_11 {dimension_numbers = #tpu.dot_dimension_numbers<[2], [1], [1], [2], [0, 0, 0, 1, 1, 2], [0], [0]>} : vector<2x8x8xf32>, vector<2x8x128xf32>, vector<2x8x128xf32> -> vector<2x8x128xf32>
    "tpu.trace_stop"() : () -> ()
    %14 = tpu.reciprocal %11 : vector<2x8x1xf32> -> vector<2x8x1xf32>
    %15 = vector.broadcast %14 : vector<2x8x1xf32> to vector<2x8x128xf32>
    %16 = arith.mulf %13, %15 : vector<2x8x128xf32>
    %c0_12 = arith.constant 0 : index
    %c0_13 = arith.constant 0 : index
    %c0_14 = arith.constant 0 : index
    %17 = vector.load %arg5[%c0_12, %c0_13, %c0_14] : memref<2x8x128xf32, #tpu.memory_space<vmem>>, vector<2x8x128xf32>
    tpu.vector_store %arg5[%c0_12, %c0_13, %c0_14], %16 {strides = array<i32>} : memref<2x8x128xf32, #tpu.memory_space<vmem>>, vector<2x8x128xf32>,
    return
  }
  func.func @transform_0(%arg0: i32, %arg1: i32) -> (i32, i32, i32) {
    %c0_i32 = arith.constant 0 : i32
    %c0_i32_0 = arith.constant 0 : i32
    return %arg0, %arg1, %c0_i32 : i32, i32, i32
  }
  func.func @transform_1(%arg0: i32, %arg1: i32) -> (i32, i32, i32) {
    %c0_i32 = arith.constant 0 : i32
    %c0_i32_0 = arith.constant 0 : i32
    %c0_i32_1 = arith.constant 0 : i32
    return %arg0, %c0_i32, %c0_i32_0 : i32, i32, i32
  }
  func.func @transform_2(%arg0: i32, %arg1: i32) -> (i32, i32, i32) {
    %c0_i32 = arith.constant 0 : i32
    %c0_i32_0 = arith.constant 0 : i32
    %c0_i32_1 = arith.constant 0 : i32
    return %arg0, %c0_i32, %c0_i32_0 : i32, i32, i32
  }
  func.func @transform_3(%arg0: i32, %arg1: i32) -> (i32, i32, i32) {
    %c0_i32 = arith.constant 0 : i32
    %c0_i32_0 = arith.constant 0 : i32
    return %arg0, %arg1, %c0_i32 : i32, i32, i32
  }
}

</mosaic_0001>

<bundles_post_ra>
// kernel: tpu_custom_call.1
= control target key start
LH: loop header
LB: loop body
LE: loop exit
PB: predicated region body
PF: predicated region fallthrough
CT: control target
= control target key end

     0   :  { %8 = vsyncpa [#allocation3], 0  ;;  %s401_s0 = inlined_call_operand.hbm [shape: f32[2,8,128], index: 0, kind: input, shape index: {}]   ;;  %s402_s1 = inlined_call_operand.hbm [shape: f32[2,8,128], index: 1, kind: input, shape index: {}]   ;;  %s403_s2 = inlined_call_operand.hbm [shape: f32[2,8,128], index: 2, kind: input, shape index: {}]   ;;  %s404_s3 = inlined_call_operand.hbm [shape: f32[2,8,128], index: 3, kind: output, shape index: {}]  }
   0x1   :  { %9 = vsyncpa [#allocation6], 0 }
   0x2   :  { %10 = vsyncpa [#allocation4], 0  ;;  %s28_s14 = sshll.u32 %s402_s1, 4  ;;  %s345_s15 = smov [#allocation5]   ;;  %s29_s14 = int_to_ptr.hbm [resolvable:$true] %s28_s14 }
   0x3   :  { %s30_s16 = sshll.u32 %s345_s15, 4  ;;  %s15_s19 = sshll.u32 %s401_s0, 4  ;;  %s31_s16 = int_to_ptr.vmem [resolvable:$true] %s30_s16  ;;  %s16_s19 = int_to_ptr.hbm [resolvable:$true] %s15_s19 }
   0x4   :  { %s346_s20 = smov 128   ;;  %s347_s21 = smov 8  }
   0x5   :  { %36 = dma.hbm_to_vmem [thread:$0]  %s29_s14, 256, %s31_s16, [#allocation6], %s346_s20, %s346_s20, %s347_s21  }
   0x6   :  { %s348_s22 = smov [#allocation2]   ;;  %s41_s1 = sshll.u32 %s403_s2, 4  ;;  %s42_s1 = int_to_ptr.hbm [resolvable:$true] %s41_s1 }
   0x7   :  { %s17_s23 = sshll.u32 %s348_s22, 4  ;;  %s349_s0 = smov [#allocation7]   ;;  %s18_s23 = int_to_ptr.vmem [resolvable:$true] %s17_s23 }
   0x8   :  { %23 = dma.hbm_to_vmem [thread:$0]  %s16_s19, 256, %s18_s23, [#allocation3], %s346_s20, %s346_s20, %s347_s21  }
   0x9   :  { %s43_s26 = sshll.u32 %s349_s0, 4  ;;  %s44_s26 = int_to_ptr.vmem [resolvable:$true] %s43_s26 }
   0xa   :  { %49 = dma.hbm_to_vmem [thread:$0]  %s42_s1, 256, %s44_s26, [#allocation6], %s346_s20, %s346_s20, %s347_s21  }
   0xb   :  { %339 = dma.done.wait [#allocation3], 256  }
   0xc   :  { %340 = vsyncadd [#allocation3], 4294967040 }
   0xd   :  { %341 = dma.done.wait [#allocation6], 512  }
   0xe   :  { %342 = vsyncadd [#allocation6], 4294966784  ;;  %v66_v0 = vld [vmem:[#allocation5] sm:$0xff]  ;;  %v62_v1 = vld [vmem:[#allocation2] sm:$0xff]  ;;  %vm108_vm0 = vcmask 64512   ;;  %s350_s2 = smov [#allocation8]  }
   0xf   :  { %v67_v2 = vld [vmem:[#allocation5 + $0x8] sm:$0xff]  ;;  %83 = vmatpush.xpose.msra.mxu0 %v66_v0  ;;  %v64_v3 = vmul.f32 0.17677669, %v62_v1  ;;  %v63_v4 = vld [vmem:[#allocation2 + $0x8] sm:$0xff]  ;;  %v127_v10 = vld [vmem:[#allocation7] sm:$0xff]  ;;  %s211_s27 = sshll.u32 %s350_s2, 4  ;;  %s212_s27 = int_to_ptr.vmem [resolvable:$true] %s211_s27 }
  0x10   :  { %103 = vmatpush.xpose.msra.mxu1 %v67_v2  ;;  %v65_v5 = vmul.f32 0.17677669, %v63_v4  ;;  %147 = vmatpush.msra.mxu2 %v127_v10  ;;  %v128_v11 = vld [vmem:[#allocation7 + $0x8] sm:$0xff]  ;;  %s213_s30 = sshll.u32 %s404_s3, 4  ;;  %s214_s30 = int_to_ptr.hbm [resolvable:$true] %s213_s30 }
  0x11   :  { %170 = vmatpush.msra.mxu3 %v128_v11 }
  0x12   :  { %84 = vmatmul.f32.vlgmr.msra.gmra.mxu0 %v64_v3 }
  0x13   :  { %104 = vmatmul.f32.vlgmr.msra.gmra.mxu1 %v65_v5 }
  0x8f   :  { %v85_v6 = vpop.f32.mrf.mxu0 }
  0x90   :  { %v109_v7 = vsel %vm108_vm0, %v85_v6, -inf  ;;  %v105_v8 = vpop.f32.mrf.mxu1 }
  0x91   :  { %110 = vmax.xlane.f32.xlu0 %v109_v7  ;;  %v112_v9 = vsel %vm108_vm0, %v105_v8, -inf }
  0x99   :  { %113 = vmax.xlane.f32.xlu0 %v112_v9 }
 0x104   :  { %v111_v12 = vpop.xlane.xlu0 %110 }
 0x105   :  { %v115_v13 = vsub.f32 %v85_v6, %v111_v12 }
 0x107   :  { %v117_v14 = vmul.f32 1.442695, %v115_v13 }
 0x109   :  { %235 = vpow2.f32 %v117_v14 }
 0x10c   :  { %v114_v15 = vpop.xlane.xlu0 %113 }
 0x10d   :  { %v116_v16 = vsub.f32 %v105_v8, %v114_v15 }
 0x10f   :  { %v236_v17 = vpop.eup %235  ;;  %v119_v18 = vmul.f32 1.442695, %v116_v16 }
 0x110   :  { %227 = vmatmul.msk.f32.vlgmr.msra.gmra.mxu2 %vm108_vm0, %v236_v17  ;;  %v121_v19 = vsel %vm108_vm0, %v236_v17, 0.0 }
 0x111   :  { %237 = vpow2.f32 %v119_v18  ;;  %122 = vadd.xlane.f32.xlu1 %v121_v19 }
 0x117   :  { %v238_v20 = vpop.eup %237 }
 0x118   :  { %228 = vmatmul.msk.f32.vlgmr.msra.gmra.mxu3 %vm108_vm0, %v238_v20  ;;  %v124_v21 = vsel %vm108_vm0, %v238_v20, 0.0 }
 0x119   :  { %125 = vadd.xlane.f32.xlu1 %v124_v21 }
 0x184   :  { %v123_v22 = vpop.xlane.xlu1 %122 }
 0x185   :  { %239 = vrcp.f32 %v123_v22  ;;  %v186_v27 = vand.u32 2147483648, %v123_v22  ;;  %v184_v29 = vand.u32 2147483647, %v123_v22  ;;  %vm180_vm2 = vweird.f32 %v123_v22 }
 0x187   :  { %v187_v32 = vor.u32 1.1754944e-38, %v186_v27  ;;  %vm185_vm4 = vcmp.eq.f32.partialorder %v184_v29, 8.507059e+37 }
 0x18b   :  { %v240_v23 = vpop.eup %239 }
 0x18c   :  { %v176_v24 = vmul.f32 %v240_v23, %v123_v22  ;;  %v126_v25 = vpop.xlane.xlu1 %125  ;;  %vm181_vm1 = vweird.f32 %v240_v23 }
 0x18d   :  { %241 = vrcp.f32 %v126_v25  ;;  %vm182_vm3 = vmor %vm180_vm2, %vm181_vm1  ;;  %v200_v39 = vand.u32 2147483648, %v126_v25  ;;  %v198_v41 = vand.u32 2147483647, %v126_v25  ;;  %vm194_vm6 = vweird.f32 %v126_v25 }
 0x18e   :  { %v177_v26 = vsub.f32 1.0, %v176_v24 }
 0x18f   :  { %v201_v43 = vor.u32 1.1754944e-38, %v200_v39  ;;  %vm199_vm8 = vcmp.eq.f32.partialorder %v198_v41, 8.507059e+37 }
 0x190   :  { %v178_v28 = vmul.f32 %v240_v23, %v177_v26 }
 0x192   :  { %v179_v30 = vadd.f32 %v240_v23, %v178_v28 }
 0x193   :  { %v242_v31 = vpop.eup %241  ;;  %v149_v35 = vpop.f32.mrf.mxu2 }
 0x194   :  { %v190_v33 = vmul.f32 %v242_v31, %v126_v25  ;;  %v183_v34 = vsel %vm182_vm3, %v240_v23, %v179_v30  ;;  %vm195_vm5 = vweird.f32 %v242_v31 }
 0x195   :  { %v188_v36 = vsel %vm185_vm4, %v187_v32, %v183_v34  ;;  %vm196_vm7 = vmor %vm194_vm6, %vm195_vm5 }
 0x196   :  { %v191_v37 = vsub.f32 1.0, %v190_v33  ;;  %v203_v38 = vmul.f32 %v188_v36, %v149_v35 }
 0x198   :  { %v192_v40 = vmul.f32 %v242_v31, %v191_v37  ;;  %205 = vst [vmem:[#allocation8] sm:$0xff] %v203_v38 }
 0x19a   :  { %v193_v42 = vadd.f32 %v242_v31, %v192_v40 }
 0x19b   :  { %v172_v45 = vpop.f32.mrf.mxu3 }
 0x19c   :  { %v197_v44 = vsel %vm196_vm7, %v242_v31, %v193_v42 }
 0x19d   :  { %v202_v46 = vsel %vm199_vm8, %v201_v43, %v197_v44 }
 0x19e   :  { %v204_v47 = vmul.f32 %v202_v46, %v172_v45 }
 0x1a0   :  { %206 = vst [vmem:[#allocation8 + $0x8] sm:$0xff] %v204_v47 }
 0x1a1   :  { %219 = dma.vmem_to_hbm [thread:$0]  %s212_s27, 256, %s214_s30, [#allocation4], %s346_s20, %s346_s20, %s347_s21  }
 0x1a2   :  { %343 = dma.done.wait [#allocation4], 256  }
 0x1a3   :  { %344 = vsyncadd [#allocation4], 4294967040 }
 0x1a4   :  { %224 = vsyncpa [#allocation3], 1 }
 0x1a5   :  { %225 = vsyncpa [#allocation6], 1 }
 0x1a6   :  { %226 = vsyncpa [#allocation4], 1 }

</bundles_post_ra>
